<compile_context>
chip_gen: v7x
topology: tpu7x:2x2x1
jax: 0.10.0
libtpu: 0.0.40
codegen_flags: <defaults>
</compile_context>

<pallas_src>
import functools

import jax
import jax.numpy as jnp
from jax.experimental import pallas as pl
from jax.experimental.pallas import tpu as pltpu


def _round_up(x, m):
    return (x + m - 1) // m * m


def _vmem_capacity_bytes():
    # Conservative fallback (v7x-sized) keeps the scoped limit legal everywhere.
    try:
        return int(pltpu.get_tpu_info().vmem_capacity_bytes)
    except Exception:
        return 64 * 1024 * 1024


def _ce_label_smooth_kernel(logits_ref, targets_ref, partial_ref, *,
                            epsilon, num_rows):
    i = pl.program_id(0)
    tb, c = logits_ref.shape

    # Validity of each row of this tile (last tile may read past the batch end).
    row_ids = i * tb + jax.lax.broadcasted_iota(jnp.int32, (tb, 1), 0)
    valid = row_ids < num_rows                                        # (TB, 1)

    # Single f32 working copy; garbage rows zeroed BEFORE max/exp so they can
    # never inject Inf/NaN into the reductions.
    x = jnp.where(valid, logits_ref[...].astype(jnp.float32), 0.0)    # (TB, C)

    # Numerically-stable log-softmax pieces; exp(x - m) is consumed by its
    # row-sum directly (no standalone `s` temporary).
    m = jnp.max(x, axis=1, keepdims=True)                             # (TB, 1)
    sumexp = jnp.sum(jnp.exp(x - m), axis=1, keepdims=True)           # (TB, 1)
    lse = jnp.log(sumexp)                                             # (TB, 1)

    sum_x = jnp.sum(x, axis=1, keepdims=True)                         # (TB, 1)

    # x[r, target[r]] via lane-iota compare (replaces torch scatter_).
    cls_ids = jax.lax.broadcasted_iota(jnp.int32, (tb, c), 1)
    tgt_x = jnp.sum(jnp.where(cls_ids == targets_ref[...], x, 0.0),
                    axis=1, keepdims=True)                            # (TB, 1)

    # sum_j log_probs[r, j] = sum_x - C*(m + lse)   (few-ULP f32 cancellation
    # for very large C; scaled by eps/C so the effect on the loss is negligible)
    row_sum_logp = sum_x - c * (m + lse)                              # (TB, 1)
    logp_at_tgt = tgt_x - m - lse                                     # (TB, 1)

    per_row = -((1.0 - epsilon) * logp_at_tgt + (epsilon / c) * row_sum_logp)
    partial_ref[0, 0] = jnp.sum(jnp.where(valid, per_row, 0.0))


def cross_entropy_label_smooth(logits, targets, epsilon=0.1,
                               block_b=None, max_block_bytes=None,
                               vmem_limit_bytes=None):
    """logits: (B, C) float, targets: (B,) int class indices -> scalar f32 loss."""
    b, c = logits.shape
    itemsize = jnp.dtype(logits.dtype).itemsize
    pack = 16 if logits.dtype == jnp.bfloat16 else 8     # sublane packing

    # Per-generation sizing: smaller wire tiles + lower scoped limit on 64-MiB
    # VMEM chips (v7x); bigger tiles on 128-MiB chips (v5e/v6e).
    vmem_cap = _vmem_capacity_bytes()
    if max_block_bytes is None:
        max_block_bytes = (4 * 1024 * 1024 if vmem_cap <= 64 * 1024 * 1024
                           else 8 * 1024 * 1024)
    if vmem_limit_bytes is None:
        vmem_limit_bytes = min(3 * vmem_cap // 4, 96 * 1024 * 1024)

    # Largest batch tile (multiple of the sublane pack) within the byte budget;
    # never larger than the batch itself (partial last tile is masked in-kernel).
    if b <= pack:
        tb = b
    else:
        tb_budget = max(pack, (max_block_bytes // max(c * itemsize, 1)) // pack * pack)
        tb = max(pack, min(tb_budget, (b // pack) * pack))
        if block_b is not None:
            tb = max(pack, min(tb, block_b))
        # Ensure >= 2 tiles so both TensorCores get work on v7x.
        if -(-b // tb) < 2:
            tb = max(pack, min(tb, _round_up(-(-b // 2), pack)))
    num_tiles = -(-b // tb)

    targets2d = targets.reshape(b, 1).astype(jnp.int32)

    kernel = functools.partial(_ce_label_smooth_kernel,
                               epsilon=float(epsilon), num_rows=b)

    partials = pl.pallas_call(
        kernel,
        out_shape=jax.ShapeDtypeStruct((num_tiles, 1), jnp.float32),
        grid_spec=pltpu.PrefetchScalarGridSpec(
            num_scalar_prefetch=0,
            grid=(num_tiles,),
            in_specs=[
                pl.BlockSpec((tb, c), lambda i: (i, 0)),   # logits tile
                pl.BlockSpec((tb, 1), lambda i: (i, 0)),   # targets tile
            ],
            out_specs=pl.BlockSpec((1, 1), lambda i: (i, 0),
                                   memory_space=pltpu.SMEM),
        ),
        compiler_params=pltpu.CompilerParams(
            dimension_semantics=("parallel",),
            vmem_limit_bytes=int(vmem_limit_bytes)),
    )(logits, targets2d)

    # Tiny cross-tile reduction + single '/B' normalization (== .mean(0).sum()).
    return jnp.sum(partials) / b


def _reference(logits, targets, epsilon=0.1):
    b, c = logits.shape
    log_probs = jax.nn.log_softmax(logits.astype(jnp.float32), axis=1)
    onehot = jax.nn.one_hot(targets, c, dtype=jnp.float32)
    smoothed = (1.0 - epsilon) * onehot + epsilon / c
    return jnp.sum(jnp.mean(-smoothed * log_probs, axis=0))


if __name__ == "__main__":
    key = jax.random.PRNGKey(0)
    k1, k2, k3, k4, k5, k6 = jax.random.split(key, 6)

    # Case 1: small, single tile, f32.
    batch, num_classes = 8, 16
    logits = jax.random.normal(k1, (batch, num_classes), dtype=jnp.float32)
    targets = jax.random.randint(k2, (batch,), 0, num_classes, dtype=jnp.int32)
    loss = jax.block_until_ready(cross_entropy_label_smooth(logits, targets, epsilon=0.1))
    ref = _reference(logits, targets, epsilon=0.1)
    assert jnp.allclose(loss, ref, atol=1e-4, rtol=1e-4), (loss, ref)

    # Case 2: multiple grid tiles + partial (masked) last tile, no wrapper pad.
    batch2, num_classes2 = 37, 96
    logits2 = jax.random.normal(k3, (batch2, num_classes2), dtype=jnp.float32)
    targets2 = jax.random.randint(k4, (batch2,), 0, num_classes2, dtype=jnp.int32)
    loss2 = jax.block_until_ready(
        cross_entropy_label_smooth(logits2, targets2, epsilon=0.1, block_b=8))
    ref2 = _reference(logits2, targets2, epsilon=0.1)
    assert jnp.allclose(loss2, ref2, atol=1e-4, rtol=1e-4), (loss2, ref2)

    # Case 3: bf16 on the wire, partial last tile.
    batch3, num_classes3 = 40, 128
    logits3 = jax.random.normal(k5, (batch3, num_classes3), dtype=jnp.bfloat16)
    targets3 = jax.random.randint(k6, (batch3,), 0, num_classes3, dtype=jnp.int32)
    loss3 = jax.block_until_ready(
        cross_entropy_label_smooth(logits3, targets3, epsilon=0.1))
    ref3 = _reference(logits3, targets3, epsilon=0.1)
    assert jnp.allclose(loss3, ref3, atol=1e-3, rtol=1e-3), (loss3, ref3)

    print("KERNEL_OK")
</pallas_src>

<mosaic_0001>
module attributes {stable_mosaic.version = 11 : i64} {
  func.func @_ce_label_smooth_kernel(%arg0: i32, %arg1: memref<8x16xf32, #tpu.memory_space<vmem>>, %arg2: memref<8x1xi32, #tpu.memory_space<vmem>>, %arg3: memref<1x1xf32, #tpu.memory_space<smem>>) attributes {dimension_semantics = [#tpu.dimension_semantics<parallel>], iteration_bounds = array<i64: 1>, scalar_prefetch = 0 : i64, scratch_operands = 0 : i64, tpu.core_type = #tpu.core_type<tc>, window_params = [{transform_indices = @transform_0, window_bounds = array<i64: 8, 16>}, {transform_indices = @transform_1, window_bounds = array<i64: 8, 1>}, {transform_indices = @transform_2, window_bounds = array<i64: 1, 1>}]} {
    %c8_i32 = arith.constant 8 : i32
    %0 = arith.muli %arg0, %c8_i32 : i32
    %1 = tpu.iota {dimensions = array<i32: 0>} : vector<8x1xi32>
    %2 = vector.broadcast %0 : i32 to vector<8x1xi32>
    %3 = arith.addi %2, %1 : vector<8x1xi32>
    %c8_i32_0 = arith.constant 8 : i32
    %4 = vector.broadcast %c8_i32_0 : i32 to vector<8x1xi32>
    %5 = arith.cmpi slt, %3, %4 : vector<8x1xi32>
    %c0 = arith.constant 0 : index
    %c0_1 = arith.constant 0 : index
    %6 = vector.load %arg1[%c0, %c0_1] : memref<8x16xf32, #tpu.memory_space<vmem>>, vector<8x16xf32>
    %cst = arith.constant 0.000000e+00 : f32
    %7 = vector.shape_cast %5 : vector<8x1xi1> to vector<8x1xi1>
    %8 = vector.broadcast %7 : vector<8x1xi1> to vector<8x16xi1>
    %9 = vector.broadcast %cst : f32 to vector<8x16xf32>
    %10 = arith.select %8, %6, %9 : vector<8x16xi1>, vector<8x16xf32>
    %cst_2 = arith.constant dense<0xFF800000> : vector<8xf32>
    %11 = vector.multi_reduction <maximumf>, %10, %cst_2 [1] : vector<8x16xf32> to vector<8xf32>
    %12 = vector.shape_cast %11 : vector<8xf32> to vector<8x1xf32>
    %13 = vector.broadcast %12 : vector<8x1xf32> to vector<8x16xf32>
    %14 = arith.subf %10, %13 : vector<8x16xf32>
    %15 = math.exp %14 : vector<8x16xf32>
    %cst_3 = arith.constant dense<0.000000e+00> : vector<8xf32>
    %16 = vector.multi_reduction <add>, %15, %cst_3 [1] : vector<8x16xf32> to vector<8xf32>
    %17 = vector.shape_cast %16 : vector<8xf32> to vector<8x1xf32>
    %18 = math.log %17 : vector<8x1xf32>
    %cst_4 = arith.constant dense<0.000000e+00> : vector<8xf32>
    %19 = vector.multi_reduction <add>, %10, %cst_4 [1] : vector<8x16xf32> to vector<8xf32>
    %20 = vector.shape_cast %19 : vector<8xf32> to vector<8x1xf32>
    %21 = tpu.iota {dimensions = array<i32: 1>} : vector<8x16xi32>
    %c0_5 = arith.constant 0 : index
    %c0_6 = arith.constant 0 : index
    %22 = vector.load %arg2[%c0_5, %c0_6] : memref<8x1xi32, #tpu.memory_space<vmem>>, vector<8x1xi32>
    %23 = vector.broadcast %22 : vector<8x1xi32> to vector<8x16xi32>
    %24 = arith.cmpi eq, %21, %23 : vector<8x16xi32>
    %cst_7 = arith.constant 0.000000e+00 : f32
    %25 = vector.broadcast %cst_7 : f32 to vector<8x16xf32>
    %26 = arith.select %24, %10, %25 : vector<8x16xi1>, vector<8x16xf32>
    %cst_8 = arith.constant dense<0.000000e+00> : vector<8xf32>
    %27 = vector.multi_reduction <add>, %26, %cst_8 [1] : vector<8x16xf32> to vector<8xf32>
    %28 = vector.shape_cast %27 : vector<8xf32> to vector<8x1xf32>
    %29 = arith.addf %12, %18 : vector<8x1xf32>
    %cst_9 = arith.constant 1.600000e+01 : f32
    %30 = vector.broadcast %cst_9 : f32 to vector<8x1xf32>
    %31 = arith.mulf %30, %29 : vector<8x1xf32>
    %32 = arith.subf %20, %31 : vector<8x1xf32>
    %33 = arith.subf %28, %12 : vector<8x1xf32>
    %34 = arith.subf %33, %18 : vector<8x1xf32>
    %cst_10 = arith.constant 0.899999976 : f32
    %35 = vector.broadcast %cst_10 : f32 to vector<8x1xf32>
    %36 = arith.mulf %35, %34 : vector<8x1xf32>
    %cst_11 = arith.constant 6.250000e-03 : f32
    %37 = vector.broadcast %cst_11 : f32 to vector<8x1xf32>
    %38 = arith.mulf %37, %32 : vector<8x1xf32>
    %39 = arith.addf %36, %38 : vector<8x1xf32>
    %cst_12 = arith.constant 0.000000e+00 : f32
    %40 = vector.broadcast %cst_12 : f32 to vector<8x1xf32>
    %41 = arith.subf %40, %39 : vector<8x1xf32>
    %cst_13 = arith.constant 0.000000e+00 : f32
    %42 = vector.broadcast %cst_13 : f32 to vector<8x1xf32>
    %43 = arith.select %5, %41, %42 : vector<8x1xi1>, vector<8x1xf32>
    %44 = vector.shape_cast %43 : vector<8x1xf32> to vector<1x8x1xf32>
    %cst_14 = arith.constant dense<0.000000e+00> : vector<1xf32>
    %45 = vector.multi_reduction <add>, %44, %cst_14 [1, 2] : vector<1x8x1xf32> to vector<1xf32>
    %46 = vector.shape_cast %45 : vector<1xf32> to vector<1x1x1xf32>
    %47 = vector.extract %46[0, 0, 0] : f32 from vector<1x1x1xf32>
    %c0_15 = arith.constant 0 : index
    %c0_16 = arith.constant 0 : index
    %48 = memref.load %arg3[%c0_15, %c0_16] : memref<1x1xf32, #tpu.memory_space<smem>>
    memref.store %47, %arg3[%c0_15, %c0_16] : memref<1x1xf32, #tpu.memory_space<smem>>
    return
  }
  func.func @transform_0(%arg0: i32) -> (i32, i32) {
    %c0_i32 = arith.constant 0 : i32
    %c0_i32_0 = arith.constant 0 : i32
    return %arg0, %c0_i32 : i32, i32
  }
  func.func @transform_1(%arg0: i32) -> (i32, i32) {
    %c0_i32 = arith.constant 0 : i32
    %c0_i32_0 = arith.constant 0 : i32
    return %arg0, %c0_i32 : i32, i32
  }
  func.func @transform_2(%arg0: i32) -> (i32, i32) {
    %c0_i32 = arith.constant 0 : i32
    %c0_i32_0 = arith.constant 0 : i32
    return %arg0, %c0_i32 : i32, i32
  }
}

</mosaic_0001>

<bundles_post_ra>
// kernel: tpu_custom_call.1
= control target key start
LH: loop header
LB: loop body
LE: loop exit
PB: predicated region body
PF: predicated region fallthrough
CT: control target
= control target key end

     0   :  { %vm22_vm0 = vcmask 130048   ;;  %s144_s0 = inlined_call_operand.vmem [shape: f32[8,16], index: 0, kind: input, shape index: {}]   ;;  %s145_s1 = inlined_call_operand.vmem [shape: s32[8,1], index: 1, kind: input, shape index: {}]   ;;  %s146_s2 = inlined_call_operand.hbm [shape: f32[1,1], index: 2, kind: output, shape index: {}]  }
   0x1   :  { %v18_v0 = vld [vmem:[%s144_s0] sm:$0xff] }
   0x2   :  { %7 = vsyncpa [#allocation3], 0  ;;  %v23_v1 = vsel %vm22_vm0, %v18_v0, -inf  ;;  %v105_v2 = vmov 0   ;;  %v39_v3 = vld [vmem:[%s145_s1] sm:$0xff]  ;;  %v37_v7 = vlaneseq  ;;  %v34_v14 = vsel %vm22_vm0, %v18_v0, 0.0 }
   0x3   :  { %88 = vset.pattern.permute.xlu0 %v105_v2  ;;  %vm58_vm2 = vcmask 7168   ;;  %s93_s14 = scalar_lea.hbm %s146_s2, 16 }
   0x4   :  { %24 = vmax.xlane.f32.xlu0 %v23_v1  ;;  %v38_v8 = vand.u32 127, %v37_v7  ;;  %p94_p0 = scmp.ne.s32.totalorder %s146_s2, %s93_s14  ;;  %p97_p1 = scmp.lt.u32.totalorder %s93_s14, %s146_s2 }
   0x6   :  { %p99_p2 = pnand %p97_p1, %p94_p0 }
  0x1a   :  { %41 = vperm.xlu0 %88, %v39_v3  }
  0x91   :  { %v25_v4 = vpop.xlane.xlu0 %24 }
  0x92   :  { %v26_v5 = vsub.f32 %v18_v0, %v25_v4 }
  0x94   :  { %v27_v6 = vmul.f32 1.442695, %v26_v5 }
  0x96   :  { %89 = vpow2.f32 %v27_v6 }
  0x99   :  { %v42_v9 = vpop.permute.xlu0 %41 }
  0x9a   :  { %vm43_vm1 = vcmp.eq.s32.totalorder %v38_v8, %v42_v9 }
  0x9b   :  { %v44_v11 = vsel %vm43_vm1, %v18_v0, 0.0 }
  0x9c   :  { %v45_v13 = vsel %vm22_vm0, %v44_v11, 0.0 }
  0xa0   :  { %v90_v10 = vpop.eup %89 }
  0xa1   :  { %v29_v12 = vsel %vm22_vm0, %v90_v10, 0.0 }
  0xa2   :  { %30 = vadd.xlane.f32.xlu1 %v29_v12 }
  0xa6   :  { %46 = vadd.xlane.f32.xlu1 %v45_v13 }
  0xaa   :  { %35 = vadd.xlane.f32.xlu1 %v34_v14 }
 0x12f   :  { %v31_v15 = vpop.xlane.xlu1 %30 }
 0x130   :  { %91 = vlog2.f32 %v31_v15 }
 0x133   :  { %v47_v17 = vpop.xlane.xlu1 %46 }
 0x134   :  { %v51_v19 = vsub.f32 %v47_v17, %v25_v4 }
 0x137   :  { %v36_v21 = vpop.xlane.xlu1 %35 }
 0x13a   :  { %v92_v16 = vpop.eup %91 }
 0x13b   :  { %v33_v18 = vmul.f32 0.6931472, %v92_v16 }
 0x13d   :  { %v48_v20 = vadd.f32 %v33_v18, %v25_v4  ;;  %v52_v22 = vsub.f32 %v51_v19, %v33_v18 }
 0x13f   :  { %v49_v23 = vmul.f32 16.0, %v48_v20  ;;  %v53_v25 = vmul.f32 0.9, %v52_v22 }
 0x141   :  { %v50_v24 = vsub.f32 %v36_v21, %v49_v23 }
 0x143   :  { %v54_v26 = vmul.f32 0.00625, %v50_v24 }
 0x145   :  { %v55_v27 = vadd.f32 %v54_v26, %v53_v25 }
 0x147   :  { %v56_v28 = vsub.f32 0.0, %v55_v27 }
 0x149   :  { %v59_v29 = vsel %vm58_vm2, %v56_v28, 0.0 }
 0x14a   :  { %60 = vadd.xlane.f32.xlu1 %v59_v29 }
 0x1d7   :  { %v61_v30 = vpop.xlane.xlu1 %60 }
 0x1d8   :  { %v62_v31 = vrot.slane %v61_v30, 4 }
 0x1da   :  { %v63_v32 = vadd.f32 %v62_v31, %v61_v30 }
 0x1dc   :  { %v64_v33 = vrot.slane %v63_v32, 2 }
 0x1de   :  { %v65_v34 = vadd.f32 %v64_v33, %v63_v32 }
 0x1e0   :  { %v66_v35 = vrot.slane %v65_v34, 1 }
 0x1e2   :  { %v67_v36 = vadd.f32 %v66_v35, %v65_v34 }
 0x1e4   :  { %84 = vpush %v67_v36 }
 0x215   :  { %s85_s0 = spop %84 }
 0x216   :  { %70 = sst [smem:[#allocation2]] %s85_s0 }
 0x217   :  { %102 = shalt.err (!%p99_p2)
}
 0x218   :  { %s106_s19 = smov [#allocation2]  }
 0x219   :  { %78 = dma.smem_to_hbm %s106_s19, 16, %s146_s2, [#allocation3]  }
 0x21a   :  { %103 = dma.done.wait [#allocation3], 16  }
 0x21b   :  { %104 = vsyncadd [#allocation3], 4294967280 }
 0x21c   :  { %82 = sfence }
 0x21d   :  { %83 = vsyncpa [#allocation3], 1 }

</bundles_post_ra>
